<compile_context>
chip_gen: v5e
topology: v5e:2x2
jax: 0.10.0
libtpu: 0.0.40
codegen_flags: <defaults>
</compile_context>

<pallas_src>
import functools

import numpy as np

import jax
import jax.numpy as jnp
from jax import lax
from jax.experimental import pallas as pl
from jax.experimental.pallas import tpu as pltpu


def _round8(n):
    return ((n + 7) // 8) * 8


def _lstm_fc_kernel(T, B, H, rows, x_ref, w_ref, out_ref):
    """Fused 2-layer LSTM recurrence (skewed) + rearrange + FC, one invocation.

    x_ref: (T*B, D_in) time-major flattened input (row t*B + b == x[b, t, :])
    w_ref: (rows, 8H) packed weight slab (see prepack_params for the layout)
    out_ref: (L, 1)
    """
    r_rec, r_win, r_bias, r_fcw, r_bfc = rows
    P = 2 * H          # packed two-layer width: [layer0 | layer1]
    G = 8 * H          # combined gate width for both layers
    D_in = x_ref.shape[1]

    # Hoisted, loop-invariant reads of the packed slab.
    w_rec = w_ref[r_rec:r_rec + P, :]          # (2H, 8H) fused recurrent weights
    w_in = w_ref[r_win:r_win + D_in, :]        # (D_in, 8H) layer-0 input weights
    bias = w_ref[r_bias:r_bias + 1, :]         # (1, 8H)  b0 | b1 (sigma cols *0.5)
    gmul = w_ref[r_bias + 1:r_bias + 2, :]     # (1, 8H)  tanh -> gate affine
    gadd = w_ref[r_bias + 2:r_bias + 3, :]
    fcw = w_ref[r_fcw:r_fcw + 2, :]            # (2, 8H) = [Wh_lo|Wc_lo|Wh_hi|Wc_hi]
    bfc = w_ref[r_bfc:r_bfc + 1, 0:1]          # (1, 1)

    # Layer-0 input projection for ALL timesteps (+ both layers' biases folded in)
    # as one (T*B, D_in) @ (D_in, 8H) matmul, off the serial recurrence path.
    xproj = jnp.dot(x_ref[...], w_in, preferred_element_type=jnp.float32) + bias

    def cell(pre, c_pack):
        # pre lanes: [i0|i1|f0|f1|g0|g1|o0|o1] (H each), sigma columns pre-scaled
        # by 0.5 so ONE tanh pass produces every nonlinearity:
        #   sigmoid(x) = 0.5*tanh(x/2) + 0.5 ; g-gate = tanh(x).
        t = jnp.tanh(pre)
        gates = t * gmul + gadd
        i_g = gates[:, 0:P]                    # [sig_i0 | sig_i1]
        f_g = gates[:, P:2 * P]                # [sig_f0 | sig_f1]
        g_g = gates[:, 2 * P:3 * P]            # [tanh_g0 | tanh_g1]
        o_g = gates[:, 3 * P:4 * P]            # [sig_o0 | sig_o1]
        c_new = f_g * c_pack + i_g * g_g       # (B, 2H) = [c0 | c1]
        h_new = o_g * jnp.tanh(c_new)          # (B, 2H) = [h0 | h1] -> next LHS
        return h_new, c_new

    # ---- Prologue: layer-0 step 0 (all states start at zero -> no matmul). ----
    h_pack, c_pack = cell(xproj[0:B, :], jnp.zeros((B, P), jnp.float32))
    lane = lax.broadcasted_iota(jnp.int32, (B, P), 1)
    keep0 = (lane < H).astype(jnp.float32)     # layer-1 "step -1" must stay zero
    h_pack = h_pack * keep0
    c_pack = c_pack * keep0

    # ---- Skewed steady state: iteration t runs layer-0 step t together with
    #      layer-1 step t-1 -> ONE fused (B,2H)@(2H,8H) matmul per iteration. ----
    for t in range(1, T):
        pre = (jnp.dot(h_pack, w_rec, preferred_element_type=jnp.float32)
               + xproj[t * B:(t + 1) * B, :])
        h_pack, c_pack = cell(pre, c_pack)
    h_last, c_last = h_pack, c_pack            # lanes 0:H  hold h0[T-1], c0[T-1]

    # ---- Drain: layer-1 step T-1 (layer-0 half of this result is discarded). ----
    pre = jnp.dot(h_pack, w_rec, preferred_element_type=jnp.float32) + bias
    h_drain, c_drain = cell(pre, c_pack)       # lanes H:2H hold h1[T-1], c1[T-1]

    # ---- Fused epilogue: rearrange([hn, cn], 'b n d h -> n (b d h)') + Linear,
    #      as masked elementwise-mul + reduce (no lane concatenations). ----
    v0 = h_last * fcw[:, 0:P] + c_last * fcw[:, P:2 * P]                  # layer 0
    v1 = h_drain * fcw[:, 2 * P:3 * P] + c_drain * fcw[:, 3 * P:4 * P]    # layer 1
    r0 = jnp.sum(jnp.sum(v0, axis=1, keepdims=True), axis=0, keepdims=True)
    r1 = jnp.sum(jnp.sum(v1, axis=1, keepdims=True), axis=0, keepdims=True)
    out_ref[...] = jnp.concatenate([r0, r1], axis=0) + bfc


def prepack_params(p, H, L=2):
    """One-time host-side packing of every parameter into a single f32 slab.

    Gate-column layout (H lanes per slab): [ i0 | i1 | f0 | f1 | g0 | g1 | o0 | o1 ]
    Sigma-gate (i, f, o) columns and biases are pre-scaled by 0.5 (tanh sigmoid).
    """
    H4, P, G = 4 * H, 2 * H, 8 * H
    w_ih0 = np.asarray(p['w_ih0'], np.float32)   # (4H, D_in)
    w_hh0 = np.asarray(p['w_hh0'], np.float32)   # (4H, H)
    w_ih1 = np.asarray(p['w_ih1'], np.float32)   # (4H, H)
    w_hh1 = np.asarray(p['w_hh1'], np.float32)   # (4H, H)
    b0 = np.asarray(p['b_ih0'], np.float32) + np.asarray(p['b_hh0'], np.float32)
    b1 = np.asarray(p['b_ih1'], np.float32) + np.asarray(p['b_hh1'], np.float32)
    w_fc = np.asarray(p['w_fc'], np.float32)     # (1, 2*L*H) == (1, 4H) since B == L
    b_fc = float(np.asarray(p['b_fc'], np.float32).reshape(()))
    D_in = w_ih0.shape[1]

    # Natural column order: [layer0 i,f,g,o | layer1 i,f,g,o].
    scale_l = np.concatenate([np.full(H, 0.5), np.full(H, 0.5),
                              np.ones(H), np.full(H, 0.5)]).astype(np.float32)
    scale = np.concatenate([scale_l, scale_l])
    perm = np.concatenate([
        np.arange(0, H), np.arange(H4, H4 + H),                         # i0 | i1
        np.arange(H, 2 * H), np.arange(H4 + H, H4 + 2 * H),             # f0 | f1
        np.arange(2 * H, 3 * H), np.arange(H4 + 2 * H, H4 + 3 * H),     # g0 | g1
        np.arange(3 * H, 4 * H), np.arange(H4 + 3 * H, H4 + 4 * H),     # o0 | o1
    ])

    def pack_cols(m):
        return (m * scale[None, :])[:, perm]

    w_in_nat = np.zeros((D_in, G), np.float32)
    w_in_nat[:, 0:H4] = w_ih0.T
    w_rec_nat = np.zeros((P, G), np.float32)
    w_rec_nat[0:H, 0:H4] = w_hh0.T      # h0 -> layer-0 gates
    w_rec_nat[0:H, H4:G] = w_ih1.T      # h0 -> layer-1 gates
    w_rec_nat[H:P, H4:G] = w_hh1.T      # h1 -> layer-1 gates (h1 -> layer-0 rows = 0)
    bias_nat = np.zeros((1, G), np.float32)
    bias_nat[0, 0:H4] = b0
    bias_nat[0, H4:G] = b1

    w_in, w_rec, bias = pack_cols(w_in_nat), pack_cols(w_rec_nat), pack_cols(bias_nat)

    # Gate affine constants (already in the permuted layout).
    gmul = np.full((1, G), 0.5, np.float32)
    gadd = np.full((1, G), 0.5, np.float32)
    gmul[0, 2 * P:3 * P] = 1.0
    gadd[0, 2 * P:3 * P] = 0.0

    # FC: out[n] = sum(h_n * Wh) + sum(c_n * Wc) + b_fc.  Layer-0 final state is
    # read from lanes 0:H of the packed state, layer-1 from lanes H:2H.
    Wh = w_fc[0, 0:P].reshape(L, H)
    Wc = w_fc[0, P:2 * P].reshape(L, H)
    fcw = np.zeros((L, G), np.float32)
    fcw[:, 0:H] = Wh                     # Wh_lo (layer-0 output row)
    fcw[:, P:P + H] = Wc                 # Wc_lo
    fcw[:, 2 * P + H:3 * P] = Wh         # Wh_hi (layer-1 output row)
    fcw[:, 3 * P + H:4 * P] = Wc         # Wc_hi

    r_rec = 0
    r_win = _round8(P)
    r_bias = _round8(r_win + D_in)
    r_fcw = _round8(r_bias + 3)
    r_bfc = _round8(r_fcw + L)
    n_rows = _round8(r_bfc + 1)

    w_all = np.zeros((n_rows, G), np.float32)
    w_all[r_rec:r_rec + P, :] = w_rec
    w_all[r_win:r_win + D_in, :] = w_in
    w_all[r_bias, :] = bias[0]
    w_all[r_bias + 1, :] = gmul[0]
    w_all[r_bias + 2, :] = gadd[0]
    w_all[r_fcw:r_fcw + L, :] = fcw
    w_all[r_bfc, 0] = b_fc
    return jnp.asarray(w_all), (r_rec, r_win, r_bias, r_fcw, r_bfc)


@functools.partial(jax.jit, static_argnames=("rows", "H", "L"))
def lstm_no_embedding_forward(x, w_all, rows, H, L=2):
    """x: (B, T, D_in) float32, batch-first like the PyTorch module."""
    B, T, D_in = x.shape
    assert B == L, "module's rearrange->Linear path requires batch == num_layers"
    # Time-major flatten (row t*B + b == x[b, t, :]) -- the only per-call glue op.
    x_flat = jnp.transpose(x, (1, 0, 2)).reshape(T * B, D_in)
    kernel = functools.partial(_lstm_fc_kernel, T, B, H, rows)
    return pl.pallas_call(
        kernel,
        out_shape=jax.ShapeDtypeStruct((L, 1), jnp.float32),
        in_specs=[pl.BlockSpec(memory_space=pltpu.MemorySpace.VMEM),
                  pl.BlockSpec(memory_space=pltpu.MemorySpace.VMEM)],
        out_specs=pl.BlockSpec(memory_space=pltpu.MemorySpace.VMEM),
    )(x_flat, w_all)


def reference_forward(x, p, H):
    """Pure-JAX reference mirroring torch.nn.LSTM + rearrange + Linear."""
    B, T, _ = x.shape
    h = [jnp.zeros((B, H), jnp.float32), jnp.zeros((B, H), jnp.float32)]
    c = [jnp.zeros((B, H), jnp.float32), jnp.zeros((B, H), jnp.float32)]
    W = [(p['w_ih0'], p['w_hh0'], p['b_ih0'], p['b_hh0']),
         (p['w_ih1'], p['w_hh1'], p['b_ih1'], p['b_hh1'])]
    for t in range(T):
        inp = x[:, t, :]
        for l in range(2):
            wih, whh, bih, bhh = W[l]
            g = inp @ wih.T + h[l] @ whh.T + bih + bhh
            i_g, f_g, g_g, o_g = jnp.split(g, 4, axis=1)
            c[l] = jax.nn.sigmoid(f_g) * c[l] + jax.nn.sigmoid(i_g) * jnp.tanh(g_g)
            h[l] = jax.nn.sigmoid(o_g) * jnp.tanh(c[l])
            inp = h[l]
    hn = jnp.stack(h)
    cn = jnp.stack(c)
    stacked = jnp.stack([hn, cn])                              # (2, L, B, H)
    feat = jnp.transpose(stacked, (1, 0, 2, 3)).reshape(2, -1)
    return feat @ p['w_fc'].T + p['b_fc']


if __name__ == "__main__":
    # Small shapes: input_dim=4, hidden_dim=32, num_layers=2, seq=8, batch=2 (=num_layers).
    B, T, D_in, H, L = 2, 8, 4, 32, 2
    key = jax.random.PRNGKey(0)
    keys = jax.random.split(key, 11)

    k_lstm = float(1.0 / (H ** 0.5))
    k_fc = float(1.0 / ((2 * L * H) ** 0.5))

    def u(k, shape, bound):
        return jax.random.uniform(k, shape, jnp.float32, -bound, bound)

    params = {
        'w_ih0': u(keys[0], (4 * H, D_in), k_lstm),
        'w_hh0': u(keys[1], (4 * H, H), k_lstm),
        'b_ih0': u(keys[2], (4 * H,), k_lstm),
        'b_hh0': u(keys[3], (4 * H,), k_lstm),
        'w_ih1': u(keys[4], (4 * H, H), k_lstm),
        'w_hh1': u(keys[5], (4 * H, H), k_lstm),
        'b_ih1': u(keys[6], (4 * H,), k_lstm),
        'b_hh1': u(keys[7], (4 * H,), k_lstm),
        'w_fc':  u(keys[8], (1, 2 * L * H), k_fc),
        'b_fc':  u(keys[9], (1,), k_fc),
    }
    x = jax.random.normal(keys[10], (B, T, D_in), jnp.float32)

    w_all, rows = prepack_params(params, H, L)        # one-time, outside per-call path
    out = lstm_no_embedding_forward(x, w_all, rows=rows, H=H, L=L)
    out = jax.block_until_ready(out)

    ref = reference_forward(x, params, H)
    assert out.shape == (L, 1), out.shape
    assert jnp.allclose(out, ref, atol=2e-4, rtol=2e-4), (out, ref)
    # TODO(synk): dropout / bidirectional / fc_hidden_dims branches are unused with
    # the module defaults (dropout=0, bidirectional=False, fc_hidden_dims=None) and
    # are not implemented.  Multi-sequence batching / v7x grid parallelism is N/A for
    # this single tiny instance (B must equal num_layers=2 for the module to shape-check).
    print("KERNEL_OK")
</pallas_src>

<mosaic_0001>
module attributes {stable_mosaic.version = 11 : i64} {
  func.func @_lstm_fc_kernel(%arg0: memref<16x4xf32, #tpu.memory_space<vmem>>, %arg1: memref<96x256xf32, #tpu.memory_space<vmem>>, %arg2: memref<2x1xf32, #tpu.memory_space<vmem>>) attributes {dimension_semantics = [], scalar_prefetch = 0 : i64, scratch_operands = 0 : i64, tpu.core_type = #tpu.core_type<tc>} {
    %c0 = arith.constant 0 : index
    %c0_0 = arith.constant 0 : index
    %0 = vector.load %arg1[%c0, %c0_0] : memref<96x256xf32, #tpu.memory_space<vmem>>, vector<64x256xf32>
    %c64 = arith.constant 64 : index
    %c0_1 = arith.constant 0 : index
    %1 = vector.load %arg1[%c64, %c0_1] : memref<96x256xf32, #tpu.memory_space<vmem>>, vector<4x256xf32>
    %c72 = arith.constant 72 : index
    %c0_2 = arith.constant 0 : index
    %2 = vector.load %arg1[%c72, %c0_2] : memref<96x256xf32, #tpu.memory_space<vmem>>, vector<1x256xf32>
    %c73 = arith.constant 73 : index
    %c0_3 = arith.constant 0 : index
    %3 = vector.load %arg1[%c73, %c0_3] : memref<96x256xf32, #tpu.memory_space<vmem>>, vector<1x256xf32>
    %c74 = arith.constant 74 : index
    %c0_4 = arith.constant 0 : index
    %4 = vector.load %arg1[%c74, %c0_4] : memref<96x256xf32, #tpu.memory_space<vmem>>, vector<1x256xf32>
    %c80 = arith.constant 80 : index
    %c0_5 = arith.constant 0 : index
    %5 = vector.load %arg1[%c80, %c0_5] : memref<96x256xf32, #tpu.memory_space<vmem>>, vector<2x256xf32>
    %c88 = arith.constant 88 : index
    %c0_6 = arith.constant 0 : index
    %6 = vector.load %arg1[%c88, %c0_6] : memref<96x256xf32, #tpu.memory_space<vmem>>, vector<1x1xf32>
    %c0_7 = arith.constant 0 : index
    %c0_8 = arith.constant 0 : index
    %7 = vector.load %arg0[%c0_7, %c0_8] : memref<16x4xf32, #tpu.memory_space<vmem>>, vector<16x4xf32>
    %cst = arith.constant dense<0.000000e+00> : vector<16x256xf32>
    %8 = tpu.matmul %7, %1, %cst {dimension_numbers = #tpu.dot_dimension_numbers<[1], [0], [0], [1], [0, 0, 1, 1], [], []>} : vector<16x4xf32>, vector<4x256xf32>, vector<16x256xf32> -> vector<16x256xf32>
    %9 = vector.broadcast %2 : vector<1x256xf32> to vector<16x256xf32>
    %10 = arith.addf %8, %9 : vector<16x256xf32>
    %11 = vector.extract_strided_slice %10 {offsets = [0, 0], sizes = [2, 256], strides = [1, 1]} : vector<16x256xf32> to vector<2x256xf32>
    %cst_9 = arith.constant 0.000000e+00 : f32
    %12 = vector.broadcast %cst_9 : f32 to vector<2x64xf32>
    %13 = math.tanh %11 : vector<2x256xf32>
    %14 = vector.broadcast %3 : vector<1x256xf32> to vector<2x256xf32>
    %15 = arith.mulf %13, %14 : vector<2x256xf32>
    %16 = vector.broadcast %4 : vector<1x256xf32> to vector<2x256xf32>
    %17 = arith.addf %15, %16 : vector<2x256xf32>
    %18 = vector.extract_strided_slice %17 {offsets = [0, 0], sizes = [2, 64], strides = [1, 1]} : vector<2x256xf32> to vector<2x64xf32>
    %19 = vector.extract_strided_slice %17 {offsets = [0, 64], sizes = [2, 64], strides = [1, 1]} : vector<2x256xf32> to vector<2x64xf32>
    %20 = vector.extract_strided_slice %17 {offsets = [0, 128], sizes = [2, 64], strides = [1, 1]} : vector<2x256xf32> to vector<2x64xf32>
    %21 = vector.extract_strided_slice %17 {offsets = [0, 192], sizes = [2, 64], strides = [1, 1]} : vector<2x256xf32> to vector<2x64xf32>
    %22 = arith.mulf %19, %12 : vector<2x64xf32>
    %23 = arith.mulf %18, %20 : vector<2x64xf32>
    %24 = arith.addf %22, %23 : vector<2x64xf32>
    %25 = math.tanh %24 : vector<2x64xf32>
    %26 = arith.mulf %21, %25 : vector<2x64xf32>
    %27 = tpu.iota {dimensions = array<i32: 1>} : vector<2x64xi32>
    %c32_i32 = arith.constant 32 : i32
    %28 = vector.broadcast %c32_i32 : i32 to vector<2x64xi32>
    %29 = arith.cmpi slt, %27, %28 : vector<2x64xi32>
    %30 = arith.extui %29 : vector<2x64xi1> to vector<2x64xi32>
    %31 = arith.sitofp %30 : vector<2x64xi32> to vector<2x64xf32>
    %32 = arith.mulf %26, %31 : vector<2x64xf32>
    %33 = arith.mulf %24, %31 : vector<2x64xf32>
    %cst_10 = arith.constant dense<0.000000e+00> : vector<2x256xf32>
    %34 = tpu.matmul %32, %0, %cst_10 {dimension_numbers = #tpu.dot_dimension_numbers<[1], [0], [0], [1], [0, 0, 1, 1], [], []>} : vector<2x64xf32>, vector<64x256xf32>, vector<2x256xf32> -> vector<2x256xf32>
    %35 = vector.extract_strided_slice %10 {offsets = [2, 0], sizes = [2, 256], strides = [1, 1]} : vector<16x256xf32> to vector<2x256xf32>
    %36 = arith.addf %34, %35 : vector<2x256xf32>
    %37 = math.tanh %36 : vector<2x256xf32>
    %38 = vector.broadcast %3 : vector<1x256xf32> to vector<2x256xf32>
    %39 = arith.mulf %37, %38 : vector<2x256xf32>
    %40 = vector.broadcast %4 : vector<1x256xf32> to vector<2x256xf32>
    %41 = arith.addf %39, %40 : vector<2x256xf32>
    %42 = vector.extract_strided_slice %41 {offsets = [0, 0], sizes = [2, 64], strides = [1, 1]} : vector<2x256xf32> to vector<2x64xf32>
    %43 = vector.extract_strided_slice %41 {offsets = [0, 64], sizes = [2, 64], strides = [1, 1]} : vector<2x256xf32> to vector<2x64xf32>
    %44 = vector.extract_strided_slice %41 {offsets = [0, 128], sizes = [2, 64], strides = [1, 1]} : vector<2x256xf32> to vector<2x64xf32>
    %45 = vector.extract_strided_slice %41 {offsets = [0, 192], sizes = [2, 64], strides = [1, 1]} : vector<2x256xf32> to vector<2x64xf32>
    %46 = arith.mulf %43, %33 : vector<2x64xf32>
    %47 = arith.mulf %42, %44 : vector<2x64xf32>
    %48 = arith.addf %46, %47 : vector<2x64xf32>
    %49 = math.tanh %48 : vector<2x64xf32>
    %50 = arith.mulf %45, %49 : vector<2x64xf32>
    %cst_11 = arith.constant dense<0.000000e+00> : vector<2x256xf32>
    %51 = tpu.matmul %50, %0, %cst_11 {dimension_numbers = #tpu.dot_dimension_numbers<[1], [0], [0], [1], [0, 0, 1, 1], [], []>} : vector<2x64xf32>, vector<64x256xf32>, vector<2x256xf32> -> vector<2x256xf32>
    %52 = vector.extract_strided_slice %10 {offsets = [4, 0], sizes = [2, 256], strides = [1, 1]} : vector<16x256xf32> to vector<2x256xf32>
    %53 = arith.addf %51, %52 : vector<2x256xf32>
    %54 = math.tanh %53 : vector<2x256xf32>
    %55 = vector.broadcast %3 : vector<1x256xf32> to vector<2x256xf32>
    %56 = arith.mulf %54, %55 : vector<2x256xf32>
    %57 = vector.broadcast %4 : vector<1x256xf32> to vector<2x256xf32>
    %58 = arith.addf %56, %57 : vector<2x256xf32>
    %59 = vector.extract_strided_slice %58 {offsets = [0, 0], sizes = [2, 64], strides = [1, 1]} : vector<2x256xf32> to vector<2x64xf32>
    %60 = vector.extract_strided_slice %58 {offsets = [0, 64], sizes = [2, 64], strides = [1, 1]} : vector<2x256xf32> to vector<2x64xf32>
    %61 = vector.extract_strided_slice %58 {offsets = [0, 128], sizes = [2, 64], strides = [1, 1]} : vector<2x256xf32> to vector<2x64xf32>
    %62 = vector.extract_strided_slice %58 {offsets = [0, 192], sizes = [2, 64], strides = [1, 1]} : vector<2x256xf32> to vector<2x64xf32>
    %63 = arith.mulf %60, %48 : vector<2x64xf32>
    %64 = arith.mulf %59, %61 : vector<2x64xf32>
    %65 = arith.addf %63, %64 : vector<2x64xf32>
    %66 = math.tanh %65 : vector<2x64xf32>
    %67 = arith.mulf %62, %66 : vector<2x64xf32>
    %cst_12 = arith.constant dense<0.000000e+00> : vector<2x256xf32>
    %68 = tpu.matmul %67, %0, %cst_12 {dimension_numbers = #tpu.dot_dimension_numbers<[1], [0], [0], [1], [0, 0, 1, 1], [], []>} : vector<2x64xf32>, vector<64x256xf32>, vector<2x256xf32> -> vector<2x256xf32>
    %69 = vector.extract_strided_slice %10 {offsets = [6, 0], sizes = [2, 256], strides = [1, 1]} : vector<16x256xf32> to vector<2x256xf32>
    %70 = arith.addf %68, %69 : vector<2x256xf32>
    %71 = math.tanh %70 : vector<2x256xf32>
    %72 = vector.broadcast %3 : vector<1x256xf32> to vector<2x256xf32>
    %73 = arith.mulf %71, %72 : vector<2x256xf32>
    %74 = vector.broadcast %4 : vector<1x256xf32> to vector<2x256xf32>
    %75 = arith.addf %73, %74 : vector<2x256xf32>
    %76 = vector.extract_strided_slice %75 {offsets = [0, 0], sizes = [2, 64], strides = [1, 1]} : vector<2x256xf32> to vector<2x64xf32>
    %77 = vector.extract_strided_slice %75 {offsets = [0, 64], sizes = [2, 64], strides = [1, 1]} : vector<2x256xf32> to vector<2x64xf32>
    %78 = vector.extract_strided_slice %75 {offsets = [0, 128], sizes = [2, 64], strides = [1, 1]} : vector<2x256xf32> to vector<2x64xf32>
    %79 = vector.extract_strided_slice %75 {offsets = [0, 192], sizes = [2, 64], strides = [1, 1]} : vector<2x256xf32> to vector<2x64xf32>
    %80 = arith.mulf %77, %65 : vector<2x64xf32>
    %81 = arith.mulf %76, %78 : vector<2x64xf32>
    %82 = arith.addf %80, %81 : vector<2x64xf32>
    %83 = math.tanh %82 : vector<2x64xf32>
    %84 = arith.mulf %79, %83 : vector<2x64xf32>
    %cst_13 = arith.constant dense<0.000000e+00> : vector<2x256xf32>
    %85 = tpu.matmul %84, %0, %cst_13 {dimension_numbers = #tpu.dot_dimension_numbers<[1], [0], [0], [1], [0, 0, 1, 1], [], []>} : vector<2x64xf32>, vector<64x256xf32>, vector<2x256xf32> -> vector<2x256xf32>
    %86 = vector.extract_strided_slice %10 {offsets = [8, 0], sizes = [2, 256], strides = [1, 1]} : vector<16x256xf32> to vector<2x256xf32>
    %87 = arith.addf %85, %86 : vector<2x256xf32>
    %88 = math.tanh %87 : vector<2x256xf32>
    %89 = vector.broadcast %3 : vector<1x256xf32> to vector<2x256xf32>
    %90 = arith.mulf %88, %89 : vector<2x256xf32>
    %91 = vector.broadcast %4 : vector<1x256xf32> to vector<2x256xf32>
    %92 = arith.addf %90, %91 : vector<2x256xf32>
    %93 = vector.extract_strided_slice %92 {offsets = [0, 0], sizes = [2, 64], strides = [1, 1]} : vector<2x256xf32> to vector<2x64xf32>
    %94 = vector.extract_strided_slice %92 {offsets = [0, 64], sizes = [2, 64], strides = [1, 1]} : vector<2x256xf32> to vector<2x64xf32>
    %95 = vector.extract_strided_slice %92 {offsets = [0, 128], sizes = [2, 64], strides = [1, 1]} : vector<2x256xf32> to vector<2x64xf32>
    %96 = vector.extract_strided_slice %92 {offsets = [0, 192], sizes = [2, 64], strides = [1, 1]} : vector<2x256xf32> to vector<2x64xf32>
    %97 = arith.mulf %94, %82 : vector<2x64xf32>
    %98 = arith.mulf %93, %95 : vector<2x64xf32>
    %99 = arith.addf %97, %98 : vector<2x64xf32>
    %100 = math.tanh %99 : vector<2x64xf32>
    %101 = arith.mulf %96, %100 : vector<2x64xf32>
    %cst_14 = arith.constant dense<0.000000e+00> : vector<2x256xf32>
    %102 = tpu.matmul %101, %0, %cst_14 {dimension_numbers = #tpu.dot_dimension_numbers<[1], [0], [0], [1], [0, 0, 1, 1], [], []>} : vector<2x64xf32>, vector<64x256xf32>, vector<2x256xf32> -> vector<2x256xf32>
    %103 = vector.extract_strided_slice %10 {offsets = [10, 0], sizes = [2, 256], strides = [1, 1]} : vector<16x256xf32> to vector<2x256xf32>
    %104 = arith.addf %102, %103 : vector<2x256xf32>
    %105 = math.tanh %104 : vector<2x256xf32>
    %106 = vector.broadcast %3 : vector<1x256xf32> to vector<2x256xf32>
    %107 = arith.mulf %105, %106 : vector<2x256xf32>
    %108 = vector.broadcast %4 : vector<1x256xf32> to vector<2x256xf32>
    %109 = arith.addf %107, %108 : vector<2x256xf32>
    %110 = vector.extract_strided_slice %109 {offsets = [0, 0], sizes = [2, 64], strides = [1, 1]} : vector<2x256xf32> to vector<2x64xf32>
    %111 = vector.extract_strided_slice %109 {offsets = [0, 64], sizes = [2, 64], strides = [1, 1]} : vector<2x256xf32> to vector<2x64xf32>
    %112 = vector.extract_strided_slice %109 {offsets = [0, 128], sizes = [2, 64], strides = [1, 1]} : vector<2x256xf32> to vector<2x64xf32>
    %113 = vector.extract_strided_slice %109 {offsets = [0, 192], sizes = [2, 64], strides = [1, 1]} : vector<2x256xf32> to vector<2x64xf32>
    %114 = arith.mulf %111, %99 : vector<2x64xf32>
    %115 = arith.mulf %110, %112 : vector<2x64xf32>
    %116 = arith.addf %114, %115 : vector<2x64xf32>
    %117 = math.tanh %116 : vector<2x64xf32>
    %118 = arith.mulf %113, %117 : vector<2x64xf32>
    %cst_15 = arith.constant dense<0.000000e+00> : vector<2x256xf32>
    %119 = tpu.matmul %118, %0, %cst_15 {dimension_numbers = #tpu.dot_dimension_numbers<[1], [0], [0], [1], [0, 0, 1, 1], [], []>} : vector<2x64xf32>, vector<64x256xf32>, vector<2x256xf32> -> vector<2x256xf32>
    %120 = vector.extract_strided_slice %10 {offsets = [12, 0], sizes = [2, 256], strides = [1, 1]} : vector<16x256xf32> to vector<2x256xf32>
    %121 = arith.addf %119, %120 : vector<2x256xf32>
    %122 = math.tanh %121 : vector<2x256xf32>
    %123 = vector.broadcast %3 : vector<1x256xf32> to vector<2x256xf32>
    %124 = arith.mulf %122, %123 : vector<2x256xf32>
    %125 = vector.broadcast %4 : vector<1x256xf32> to vector<2x256xf32>
    %126 = arith.addf %124, %125 : vector<2x256xf32>
    %127 = vector.extract_strided_slice %126 {offsets = [0, 0], sizes = [2, 64], strides = [1, 1]} : vector<2x256xf32> to vector<2x64xf32>
    %128 = vector.extract_strided_slice %126 {offsets = [0, 64], sizes = [2, 64], strides = [1, 1]} : vector<2x256xf32> to vector<2x64xf32>
    %129 = vector.extract_strided_slice %126 {offsets = [0, 128], sizes = [2, 64], strides = [1, 1]} : vector<2x256xf32> to vector<2x64xf32>
    %130 = vector.extract_strided_slice %126 {offsets = [0, 192], sizes = [2, 64], strides = [1, 1]} : vector<2x256xf32> to vector<2x64xf32>
    %131 = arith.mulf %128, %116 : vector<2x64xf32>
    %132 = arith.mulf %127, %129 : vector<2x64xf32>
    %133 = arith.addf %131, %132 : vector<2x64xf32>
    %134 = math.tanh %133 : vector<2x64xf32>
    %135 = arith.mulf %130, %134 : vector<2x64xf32>
    %cst_16 = arith.constant dense<0.000000e+00> : vector<2x256xf32>
    %136 = tpu.matmul %135, %0, %cst_16 {dimension_numbers = #tpu.dot_dimension_numbers<[1], [0], [0], [1], [0, 0, 1, 1], [], []>} : vector<2x64xf32>, vector<64x256xf32>, vector<2x256xf32> -> vector<2x256xf32>
    %137 = vector.extract_strided_slice %10 {offsets = [14, 0], sizes = [2, 256], strides = [1, 1]} : vector<16x256xf32> to vector<2x256xf32>
    %138 = arith.addf %136, %137 : vector<2x256xf32>
    %139 = math.tanh %138 : vector<2x256xf32>
    %140 = vector.broadcast %3 : vector<1x256xf32> to vector<2x256xf32>
    %141 = arith.mulf %139, %140 : vector<2x256xf32>
    %142 = vector.broadcast %4 : vector<1x256xf32> to vector<2x256xf32>
    %143 = arith.addf %141, %142 : vector<2x256xf32>
    %144 = vector.extract_strided_slice %143 {offsets = [0, 0], sizes = [2, 64], strides = [1, 1]} : vector<2x256xf32> to vector<2x64xf32>
    %145 = vector.extract_strided_slice %143 {offsets = [0, 64], sizes = [2, 64], strides = [1, 1]} : vector<2x256xf32> to vector<2x64xf32>
    %146 = vector.extract_strided_slice %143 {offsets = [0, 128], sizes = [2, 64], strides = [1, 1]} : vector<2x256xf32> to vector<2x64xf32>
    %147 = vector.extract_strided_slice %143 {offsets = [0, 192], sizes = [2, 64], strides = [1, 1]} : vector<2x256xf32> to vector<2x64xf32>
    %148 = arith.mulf %145, %133 : vector<2x64xf32>
    %149 = arith.mulf %144, %146 : vector<2x64xf32>
    %150 = arith.addf %148, %149 : vector<2x64xf32>
    %151 = math.tanh %150 : vector<2x64xf32>
    %152 = arith.mulf %147, %151 : vector<2x64xf32>
    %cst_17 = arith.constant dense<0.000000e+00> : vector<2x256xf32>
    %153 = tpu.matmul %152, %0, %cst_17 {dimension_numbers = #tpu.dot_dimension_numbers<[1], [0], [0], [1], [0, 0, 1, 1], [], []>} : vector<2x64xf32>, vector<64x256xf32>, vector<2x256xf32> -> vector<2x256xf32>
    %154 = vector.broadcast %2 : vector<1x256xf32> to vector<2x256xf32>
    %155 = arith.addf %153, %154 : vector<2x256xf32>
    %156 = math.tanh %155 : vector<2x256xf32>
    %157 = vector.broadcast %3 : vector<1x256xf32> to vector<2x256xf32>
    %158 = arith.mulf %156, %157 : vector<2x256xf32>
    %159 = vector.broadcast %4 : vector<1x256xf32> to vector<2x256xf32>
    %160 = arith.addf %158, %159 : vector<2x256xf32>
    %161 = vector.extract_strided_slice %160 {offsets = [0, 0], sizes = [2, 64], strides = [1, 1]} : vector<2x256xf32> to vector<2x64xf32>
    %162 = vector.extract_strided_slice %160 {offsets = [0, 64], sizes = [2, 64], strides = [1, 1]} : vector<2x256xf32> to vector<2x64xf32>
    %163 = vector.extract_strided_slice %160 {offsets = [0, 128], sizes = [2, 64], strides = [1, 1]} : vector<2x256xf32> to vector<2x64xf32>
    %164 = vector.extract_strided_slice %160 {offsets = [0, 192], sizes = [2, 64], strides = [1, 1]} : vector<2x256xf32> to vector<2x64xf32>
    %165 = arith.mulf %162, %150 : vector<2x64xf32>
    %166 = arith.mulf %161, %163 : vector<2x64xf32>
    %167 = arith.addf %165, %166 : vector<2x64xf32>
    %168 = math.tanh %167 : vector<2x64xf32>
    %169 = arith.mulf %164, %168 : vector<2x64xf32>
    %170 = vector.extract_strided_slice %5 {offsets = [0, 0], sizes = [2, 64], strides = [1, 1]} : vector<2x256xf32> to vector<2x64xf32>
    %171 = arith.mulf %152, %170 : vector<2x64xf32>
    %172 = vector.extract_strided_slice %5 {offsets = [0, 64], sizes = [2, 64], strides = [1, 1]} : vector<2x256xf32> to vector<2x64xf32>
    %173 = arith.mulf %150, %172 : vector<2x64xf32>
    %174 = arith.addf %171, %173 : vector<2x64xf32>
    %175 = vector.extract_strided_slice %5 {offsets = [0, 128], sizes = [2, 64], strides = [1, 1]} : vector<2x256xf32> to vector<2x64xf32>
    %176 = arith.mulf %169, %175 : vector<2x64xf32>
    %177 = vector.extract_strided_slice %5 {offsets = [0, 192], sizes = [2, 64], strides = [1, 1]} : vector<2x256xf32> to vector<2x64xf32>
    %178 = arith.mulf %167, %177 : vector<2x64xf32>
    %179 = arith.addf %176, %178 : vector<2x64xf32>
    %cst_18 = arith.constant dense<0.000000e+00> : vector<2xf32>
    %180 = vector.multi_reduction <add>, %174, %cst_18 [1] : vector<2x64xf32> to vector<2xf32>
    %181 = vector.shape_cast %180 : vector<2xf32> to vector<2x1xf32>
    %cst_19 = arith.constant dense<0.000000e+00> : vector<1xf32>
    %182 = vector.multi_reduction <add>, %181, %cst_19 [0] : vector<2x1xf32> to vector<1xf32>
    %183 = vector.shape_cast %182 : vector<1xf32> to vector<1x1xf32>
    %cst_20 = arith.constant dense<0.000000e+00> : vector<2xf32>
    %184 = vector.multi_reduction <add>, %179, %cst_20 [1] : vector<2x64xf32> to vector<2xf32>
    %185 = vector.shape_cast %184 : vector<2xf32> to vector<2x1xf32>
    %cst_21 = arith.constant dense<0.000000e+00> : vector<1xf32>
    %186 = vector.multi_reduction <add>, %185, %cst_21 [0] : vector<2x1xf32> to vector<1xf32>
    %187 = vector.shape_cast %186 : vector<1xf32> to vector<1x1xf32>
    %188 = tpu.concatenate %183, %187 in 0 : vector<1x1xf32>, vector<1x1xf32> -> vector<2x1xf32>
    %189 = vector.broadcast %6 : vector<1x1xf32> to vector<2x1xf32>
    %190 = arith.addf %188, %189 : vector<2x1xf32>
    %c0_22 = arith.constant 0 : index
    %c0_23 = arith.constant 0 : index
    %191 = vector.load %arg2[%c0_22, %c0_23] : memref<2x1xf32, #tpu.memory_space<vmem>>, vector<2x1xf32>
    tpu.vector_store %arg2[%c0_22, %c0_23], %190 {strides = array<i32>} : memref<2x1xf32, #tpu.memory_space<vmem>>, vector<2x1xf32>,
    return
  }
}

</mosaic_0001>

<bundles_post_ra>
// kernel: lstm_no_embedding_forward.1
= control target key start
LH: loop header
LB: loop body
LE: loop exit
PB: predicated region body
PF: predicated region fallthrough
CT: control target
= control target key end

     0   :  { %7 = vsyncpa [#allocation3], 0  ;;  %s828_s12 = smov [#allocation2]   ;;  %s829_s14 = smov 256   ;;  %s1154_s0 = inlined_call_operand.vmem [shape: f32[16,4], index: 0, kind: input, shape index: {}]   ;;  %s1155_s1 = inlined_call_operand.hbm [shape: f32[96,256], index: 1, kind: input, shape index: {}]   ;;  %s1156_s2 = inlined_call_operand.vmem [shape: f32[2,1], index: 2, kind: output, shape index: {}]  }
   0x1   :  { %s14_s11 = sshll.u32 %s1155_s1, 4  ;;  %s16_s13 = sshll.u32 %s828_s12, 4  ;;  %s15_s11 = int_to_ptr.hbm [resolvable:$true] %s14_s11  ;;  %s17_s13 = int_to_ptr.vmem [resolvable:$true] %s16_s13 }
   0x2   :  { %s830_s15 = smov 16  }
   0x3   :  { %22 = dma.hbm_to_vmem [thread:$0]  %s15_s11, 3072, %s17_s13, [#allocation3], %s829_s14, %s829_s14, %s830_s15  }
   0x4   :  { %826 = dma.done.wait [#allocation3], 3072  }
   0x5   :  { %827 = vsyncadd [#allocation3], 4294964224  ;;  %vm68_vm0 = vcmask 1043456   ;;  %vm61_vm1 = vcmask 31744   ;;  %v43_v0 = vld [vmem:[#allocation2 + $0x80] sm:$0xf]  ;;  %v146_v20 = vlaneseq }
   0x6   :  { %v44_v1 = vld [vmem:[#allocation2 + $0x88] sm:$0xf]  ;;  %v54_v2 = vld [vmem:[%s1154_s0] sm:$0xff]  ;;  %720 = vmatpush.msk.msra.mxu0 %vm68_vm0, %v43_v0  ;;  %v46_v3 = vld [vmem:[#allocation2 + $0x90] ss:$8 sm:$0x3] }
   0x7   :  { %723 = vmatpush.msk.msra.mxu1 %vm68_vm0, %v44_v1  ;;  %721 = vmatmul.msk.f32.vlgmr.msra.gmra.mxu0 %vm61_vm1, %v54_v2  ;;  %v856_v4 = vperm.slane %v46_v3, 0  ;;  %v858_v5 = vperm.slane %v46_v3, 1  ;;  %v48_v10 = vld [vmem:[#allocation2 + $0x91] ss:$8 sm:$0x3]  ;;  %v147_v24 = vand.u32 127, %v146_v20 }
   0x8   :  { %724 = vmatmul.msk.f32.vlgmr.msra.gmra.mxu1 %vm61_vm1, %v54_v2  ;;  %v50_v11 = vld [vmem:[#allocation2 + $0x92] ss:$8 sm:$0x3]  ;;  %v868_v12 = vperm.slane %v48_v10, 0  ;;  %v870_v13 = vperm.slane %v48_v10, 1  ;;  %s831_s1 = smov 64  }
   0x9   :  { %v872_v14 = vperm.slane %v50_v11, 0  ;;  %v874_v16 = vperm.slane %v50_v11, 1  ;;  %vm148_vm2 = vcmp.lt.s32.totalorder %v147_v24, 32  ;;  %v832_v25 = vmov 0.0   ;;  %v882_v27 = vld [vmem:[#allocation2 + $0x70] sm:$0xff]  ;;  %v884_v28 = vld [vmem:[#allocation2 + $0x78] sm:$0xff] }
   0xa   :  { %v726_v26 = vsel %vm148_vm2, 1.0, %v832_v25  ;;  %v886_v29 = vld [vmem:[#allocation2 + $0x60] sm:$0xff]  ;;  %177 = vmatpush.msra.mxu2 %v882_v27  ;;  %197 = vmatpush.msra.mxu3 %v884_v28  ;;  %v890_v30 = vld [vmem:[#allocation2 + $0x68] sm:$0xff]  ;;  %v892_v31 = vld [vmem:[#allocation2 + $0x50] sm:$0xff]  ;;  %vm166_vm3 = vcmask 523264   ;;  %vm684_vm4 = vcmask 517120  }
   0xb   :  { %v894_v32 = vld [vmem:[#allocation2 + $0x58] sm:$0xff]  ;;  %241 = vmatpush.msrb.mxu0 %v882_v27  ;;  %261 = vmatpush.msrb.mxu1 %v884_v28  ;;  %v900_v33 = vld [vmem:[#allocation2 + $0x40] sm:$0xff]  ;;  %v902_v34 = vld [vmem:[#allocation2 + $0x48] sm:$0xff]  ;;  %vm688_vm5 = vcmask 1041408   ;;  %vm710_vm6 = vcmask 1040384   ;;  %vm713_vm7 = vcmask 1024  }
   0xc   :  { %178 = vmatpush.msra.mxu2 %v886_v29  ;;  %198 = vmatpush.msra.mxu3 %v890_v30  ;;  %v908_v35 = vld [vmem:[#allocation2 + $0x30] sm:$0xff]  ;;  %v910_v36 = vld [vmem:[#allocation2 + $0x38] sm:$0xff]  ;;  %v916_v37 = vld [vmem:[#allocation2 + $0x20] sm:$0xff] }
   0xd   :  { %242 = vmatpush.msrb.mxu0 %v886_v29  ;;  %262 = vmatpush.msrb.mxu1 %v890_v30  ;;  %v918_v38 = vld [vmem:[#allocation2 + $0x28] sm:$0xff]  ;;  %v924_v39 = vld [vmem:[#allocation2 + $0x10] sm:$0xff]  ;;  %v926_v40 = vld [vmem:[#allocation2 + $0x18] sm:$0xff] }
   0xe   :  { %179 = vmatpush.msra.mxu2 %v892_v31  ;;  %199 = vmatpush.msra.mxu3 %v894_v32  ;;  %v945_v48 = vld [vmem:[#allocation2] sm:$0xff]  ;;  %v947_v49 = vld [vmem:[#allocation2 + $0x8] sm:$0xff] }
   0xf   :  { %243 = vmatpush.msrb.mxu0 %v892_v31  ;;  %263 = vmatpush.msrb.mxu1 %v894_v32  ;;  %v55_v2 = vld [vmem:[%s1154_s0 + $0x8] sm:$0xff] }
  0x10   :  { %180 = vmatpush.msra.mxu2 %v900_v33  ;;  %200 = vmatpush.msra.mxu3 %v902_v34 }
  0x11   :  { %244 = vmatpush.msrb.mxu0 %v900_v33  ;;  %264 = vmatpush.msrb.mxu1 %v902_v34 }
  0x12   :  { %181 = vmatpush.msra.mxu2 %v908_v35  ;;  %201 = vmatpush.msra.mxu3 %v910_v36 }
  0x13   :  { %245 = vmatpush.msrb.mxu0 %v908_v35  ;;  %265 = vmatpush.msrb.mxu1 %v910_v36 }
  0x14   :  { %182 = vmatpush.msra.mxu2 %v916_v37  ;;  %202 = vmatpush.msra.mxu3 %v918_v38 }
  0x15   :  { %246 = vmatpush.msrb.mxu0 %v916_v37  ;;  %266 = vmatpush.msrb.mxu1 %v918_v38 }
  0x16   :  { %183 = vmatpush.msra.mxu2 %v924_v39  ;;  %203 = vmatpush.msra.mxu3 %v926_v40 }
  0x17   :  { %247 = vmatpush.msrb.mxu0 %v924_v39  ;;  %267 = vmatpush.msrb.mxu1 %v926_v40 }
  0x18   :  { %184 = vmatpush.msra.mxu2 %v945_v48  ;;  %204 = vmatpush.msra.mxu3 %v947_v49 }
  0x19   :  { %248 = vmatpush.msrb.mxu0 %v945_v48  ;;  %268 = vmatpush.msrb.mxu1 %v947_v49 }
  0x1a   :  { %305 = vmatpush.msrb.mxu2 %v882_v27  ;;  %325 = vmatpush.msrb.mxu3 %v884_v28 }
  0x1b   :  { %365 = vmatpush.msra.mxu0 %v882_v27  ;;  %385 = vmatpush.msra.mxu1 %v884_v28 }
  0x1c   :  { %306 = vmatpush.msrb.mxu2 %v886_v29  ;;  %326 = vmatpush.msrb.mxu3 %v890_v30 }
  0x1d   :  { %366 = vmatpush.msra.mxu0 %v886_v29  ;;  %386 = vmatpush.msra.mxu1 %v890_v30 }
  0x1e   :  { %307 = vmatpush.msrb.mxu2 %v892_v31  ;;  %327 = vmatpush.msrb.mxu3 %v894_v32 }
  0x1f   :  { %367 = vmatpush.msra.mxu0 %v892_v31  ;;  %387 = vmatpush.msra.mxu1 %v894_v32 }
  0x20   :  { %308 = vmatpush.msrb.mxu2 %v900_v33  ;;  %328 = vmatpush.msrb.mxu3 %v902_v34 }
  0x21   :  { %368 = vmatpush.msra.mxu0 %v900_v33  ;;  %388 = vmatpush.msra.mxu1 %v902_v34 }
  0x22   :  { %309 = vmatpush.msrb.mxu2 %v908_v35  ;;  %329 = vmatpush.msrb.mxu3 %v910_v36 }
  0x23   :  { %369 = vmatpush.msra.mxu0 %v908_v35  ;;  %389 = vmatpush.msra.mxu1 %v910_v36 }
  0x24   :  { %310 = vmatpush.msrb.mxu2 %v916_v37  ;;  %330 = vmatpush.msrb.mxu3 %v918_v38 }
  0x25   :  { %370 = vmatpush.msra.mxu0 %v916_v37  ;;  %390 = vmatpush.msra.mxu1 %v918_v38 }
  0x26   :  { %311 = vmatpush.msrb.mxu2 %v924_v39  ;;  %331 = vmatpush.msrb.mxu3 %v926_v40 }
  0x27   :  { %371 = vmatpush.msra.mxu0 %v924_v39  ;;  %391 = vmatpush.msra.mxu1 %v926_v40 }
  0x28   :  { %312 = vmatpush.msrb.mxu2 %v945_v48  ;;  %332 = vmatpush.msrb.mxu3 %v947_v49 }
  0x29   :  { %372 = vmatpush.msra.mxu0 %v945_v48  ;;  %392 = vmatpush.msra.mxu1 %v947_v49 }
  0x2a   :  { %722 = vmatmul.msk.f32.gmra.mxu0 %vm61_vm1, %v55_v2  ;;  %725 = vmatmul.msk.f32.gmra.mxu1 %vm61_vm1, %v55_v2 }
  0x84   :  { %v92_v6 = vpop.f32.mrf.mxu0 }
  0x85   :  { %v115_v7 = vpop.f32.mrf.mxu1  ;;  %v861_v8 = vadd.f32 %v92_v6, %v856_v4 }
  0x86   :  { %v864_v9 = vadd.f32 %v115_v7, %v858_v5 }
  0x87   :  { %748 = vtanh.f32 %v861_v8  ;;  %v162_v51 = vrot.slane %v861_v8, 2 }
  0x88   :  { %750 = vtanh.f32 %v864_v9  ;;  %v163_v52 = vrot.slane %v864_v9, 2 }
  0x8d   :  { %v749_v15 = vpop.eup %748 }
  0x8e   :  { %v751_v17 = vpop.eup %750  ;;  %v128_v18 = vmul.f32 %v749_v15, %v868_v12 }
  0x8f   :  { %v129_v19 = vmul.f32 %v751_v17, %v870_v13 }
  0x90   :  { %v135_v21 = vadd.f32 %v872_v14, %v128_v18  ;;  %v227_v18 = vrot.slane %v861_v8, 4 }
  0x91   :  { %v136_v22 = vadd.f32 %v874_v16, %v129_v19  ;;  %v228_v19 = vrot.slane %v864_v9, 4 }
  0x92   :  { %v137_v41 = vmul.f32 0.0, %v135_v21 }
  0x93   :  { %v138_v23 = vmul.f32 %v136_v22, %v135_v21 }
  0x95   :  { %140 = vrot.lane.b32.xlu0 %v138_v23, %s831_s1 }
  0x9d   :  { %152 = vrot.lane.b32.xlu0 %v726_v26, %s831_s1 }
  0xa7   :  { %v1036_v15 = vpop.f32.mrf.mxu0  ;;  %v1038_v17 = vpop.f32.mrf.mxu1 }
 0x107   :  { %v141_v42 = vpop.permute.xlu0 %140 }
 0x108   :  { %v938_v43 = vadd.f32 %v141_v42, %v137_v41 }
 0x10a   :  { %752 = vtanh.f32 %v938_v43 }
 0x10f   :  { %v941_v46 = vpop.permute.xlu0 %152 }
 0x110   :  { %v753_v44 = vpop.eup %752  ;;  %v156_v61 = vmul.f32 %v941_v46, %v938_v43 }
 0x111   :  { %v145_v45 = vmul.f32 %v753_v44, %v136_v22 }
 0x113   :  { %v155_v47 = vmul.f32 %v941_v46, %v145_v45 }
 0x115   :  { %158 = vrot.lane.b32.xlu1 %v155_v47, %s831_s1 }
 0x187   :  { %v159_v50 = vpop.permute.xlu1 %158 }
 0x188   :  { %727 = vmatmul.msk.f32.vlgmr.msra.gmra.mxu2 %vm166_vm3, %v159_v50  ;;  %728 = vmatmul.msk.f32.vlgmr.msra.gmra.mxu3 %vm166_vm3, %v159_v50 }
 0x189   :  { %431 = vmatpush.msra.mxu2 %v882_v27  ;;  %451 = vmatpush.msra.mxu3 %v884_v28 }
 0x18b   :  { %432 = vmatpush.msra.mxu2 %v886_v29  ;;  %452 = vmatpush.msra.mxu3 %v890_v30 }
 0x18d   :  { %433 = vmatpush.msra.mxu2 %v892_v31  ;;  %453 = vmatpush.msra.mxu3 %v894_v32 }
 0x18f   :  { %434 = vmatpush.msra.mxu2 %v900_v33  ;;  %454 = vmatpush.msra.mxu3 %v902_v34 }
 0x191   :  { %435 = vmatpush.msra.mxu2 %v908_v35  ;;  %455 = vmatpush.msra.mxu3 %v910_v36 }
 0x193   :  { %436 = vmatpush.msra.mxu2 %v916_v37  ;;  %456 = vmatpush.msra.mxu3 %v918_v38 }
 0x195   :  { %437 = vmatpush.msra.mxu2 %v924_v39  ;;  %457 = vmatpush.msra.mxu3 %v926_v40 }
 0x197   :  { %438 = vmatpush.msra.mxu2 %v945_v48  ;;  %458 = vmatpush.msra.mxu3 %v947_v49 }
 0x20b   :  { %v186_v53 = vpop.f32.mrf.mxu2  ;;  %v206_v54 = vpop.f32.mrf.mxu3 }
 0x20c   :  { %v187_v55 = vadd.f32 %v186_v53, %v162_v51  ;;  %v207_v56 = vadd.f32 %v206_v54, %v163_v52  ;;  %v291_v53 = vrot.slane %v861_v8, 6  ;;  %v292_v54 = vrot.slane %v864_v9, 6 }
 0x20e   :  { %754 = vtanh.f32 %v187_v55 }
 0x20f   :  { %756 = vtanh.f32 %v207_v56 }
 0x214   :  { %v755_v57 = vpop.eup %754 }
 0x215   :  { %v757_v58 = vpop.eup %756  ;;  %v211_v59 = vmul.f32 %v755_v57, %v868_v12 }
 0x216   :  { %v212_v60 = vmul.f32 %v757_v58, %v870_v13 }
 0x217   :  { %v213_v62 = vadd.f32 %v211_v59, %v872_v14 }
 0x218   :  { %v214_v63 = vadd.f32 %v212_v60, %v874_v16 }
 0x219   :  { %v215_v0 = vmul.f32 %v213_v62, %v156_v61 }
 0x21a   :  { %v216_v1 = vmul.f32 %v214_v63, %v213_v62 }
 0x21c   :  { %218 = vrot.lane.b32.xlu1 %v216_v1, %s831_s1 }
 0x28e   :  { %v219_v3 = vpop.permute.xlu1 %218 }
 0x28f   :  { %v221_v6 = vadd.f32 %v219_v3, %v215_v0 }
 0x291   :  { %758 = vtanh.f32 %v221_v6 }
 0x297   :  { %v759_v7 = vpop.eup %758 }
 0x298   :  { %v223_v10 = vmul.f32 %v759_v7, %v214_v63 }
 0x29a   :  { %225 = vrot.lane.b32.xlu2 %v223_v10, %s831_s1 }
 0x2f4   :  { %v226_v11 = vpop.permute.xlu2 %225 }
 0x2f5   :  { %729 = vmatmul.msk.f32.vlgmr.msrb.gmra.mxu0 %vm166_vm3, %v226_v11  ;;  %730 = vmatmul.msk.f32.vlgmr.msrb.gmra.mxu1 %vm166_vm3, %v226_v11 }
 0x2f6   :  { %495 = vmatpush.msrb.mxu0 %v882_v27  ;;  %515 = vmatpush.msrb.mxu1 %v884_v28 }
 0x2f8   :  { %496 = vmatpush.msrb.mxu0 %v886_v29  ;;  %516 = vmatpush.msrb.mxu1 %v890_v30 }
 0x2fa   :  { %497 = vmatpush.msrb.mxu0 %v892_v31  ;;  %517 = vmatpush.msrb.mxu1 %v894_v32 }
 0x2fc   :  { %498 = vmatpush.msrb.mxu0 %v900_v33  ;;  %518 = vmatpush.msrb.mxu1 %v902_v34 }
 0x2fe   :  { %499 = vmatpush.msrb.mxu0 %v908_v35  ;;  %519 = vmatpush.msrb.mxu1 %v910_v36 }
 0x300   :  { %500 = vmatpush.msrb.mxu0 %v916_v37  ;;  %520 = vmatpush.msrb.mxu1 %v918_v38 }
 0x302   :  { %501 = vmatpush.msrb.mxu0 %v924_v39  ;;  %521 = vmatpush.msrb.mxu1 %v926_v40 }
 0x304   :  { %502 = vmatpush.msrb.mxu0 %v945_v48  ;;  %522 = vmatpush.msrb.mxu1 %v947_v49 }
 0x372   :  { %v250_v20 = vpop.f32.mrf.mxu0  ;;  %v270_v21 = vpop.f32.mrf.mxu1 }
 0x373   :  { %v251_v22 = vadd.f32 %v250_v20, %v227_v18  ;;  %v271_v23 = vadd.f32 %v270_v21, %v228_v19 }
 0x375   :  { %760 = vtanh.f32 %v251_v22 }
 0x376   :  { %762 = vtanh.f32 %v271_v23 }
 0x37b   :  { %v761_v24 = vpop.eup %760 }
 0x37c   :  { %v763_v25 = vpop.eup %762  ;;  %v275_v26 = vmul.f32 %v761_v24, %v868_v12 }
 0x37d   :  { %v276_v41 = vmul.f32 %v763_v25, %v870_v13 }
 0x37e   :  { %v277_v42 = vadd.f32 %v275_v26, %v872_v14 }
 0x37f   :  { %v278_v43 = vadd.f32 %v276_v41, %v874_v16 }
 0x380   :  { %v279_v45 = vmul.f32 %v277_v42, %v221_v6 }
 0x381   :  { %v280_v44 = vmul.f32 %v278_v43, %v277_v42 }
 0x383   :  { %282 = vrot.lane.b32.xlu2 %v280_v44, %s831_s1 }
 0x3dd   :  { %v283_v46 = vpop.permute.xlu2 %282 }
 0x3de   :  { %v285_v47 = vadd.f32 %v283_v46, %v279_v45 }
 0x3e0   :  { %764 = vtanh.f32 %v285_v47 }
 0x3e6   :  { %v765_v50 = vpop.eup %764 }
 0x3e7   :  { %v287_v51 = vmul.f32 %v765_v50, %v278_v43 }
 0x3e9   :  { %289 = vrot.lane.b32.xlu0 %v287_v51, %s831_s1 }
 0x45b   :  { %v290_v52 = vpop.permute.xlu0 %289 }
 0x45c   :  { %731 = vmatmul.msk.f32.vlgmr.msrb.gmra.mxu2 %vm166_vm3, %v290_v52  ;;  %732 = vmatmul.msk.f32.vlgmr.msrb.gmra.mxu3 %vm166_vm3, %v290_v52 }
 0x45d   :  { %559 = vmatpush.msrb.mxu2 %v882_v27  ;;  %579 = vmatpush.msrb.mxu3 %v884_v28 }
 0x45f   :  { %560 = vmatpush.msrb.mxu2 %v886_v29  ;;  %580 = vmatpush.msrb.mxu3 %v890_v30 }
 0x461   :  { %561 = vmatpush.msrb.mxu2 %v892_v31  ;;  %581 = vmatpush.msrb.mxu3 %v894_v32 }
 0x463   :  { %562 = vmatpush.msrb.mxu2 %v900_v33  ;;  %582 = vmatpush.msrb.mxu3 %v902_v34 }
 0x465   :  { %563 = vmatpush.msrb.mxu2 %v908_v35  ;;  %583 = vmatpush.msrb.mxu3 %v910_v36 }
 0x467   :  { %564 = vmatpush.msrb.mxu2 %v916_v37  ;;  %584 = vmatpush.msrb.mxu3 %v918_v38 }
 0x469   :  { %565 = vmatpush.msrb.mxu2 %v924_v39  ;;  %585 = vmatpush.msrb.mxu3 %v926_v40 }
 0x46b   :  { %566 = vmatpush.msrb.mxu2 %v945_v48  ;;  %586 = vmatpush.msrb.mxu3 %v947_v49 }
 0x4df   :  { %v314_v55 = vpop.f32.mrf.mxu2  ;;  %v334_v56 = vpop.f32.mrf.mxu3 }
 0x4e0   :  { %v315_v57 = vadd.f32 %v314_v55, %v291_v53  ;;  %v335_v58 = vadd.f32 %v334_v56, %v292_v54 }
 0x4e2   :  { %766 = vtanh.f32 %v315_v57 }
 0x4e3   :  { %768 = vtanh.f32 %v335_v58 }
 0x4e8   :  { %v767_v59 = vpop.eup %766 }
 0x4e9   :  { %v769_v60 = vpop.eup %768  ;;  %v339_v61 = vmul.f32 %v767_v59, %v868_v12 }
 0x4ea   :  { %v340_v62 = vmul.f32 %v769_v60, %v870_v13 }
 0x4eb   :  { %v341_v63 = vadd.f32 %v339_v61, %v872_v14 }
 0x4ec   :  { %v342_v0 = vadd.f32 %v340_v62, %v874_v16 }
 0x4ed   :  { %v343_v8 = vmul.f32 %v341_v63, %v285_v47 }
 0x4ee   :  { %v344_v1 = vmul.f32 %v342_v0, %v341_v63 }
 0x4f0   :  { %346 = vrot.lane.b32.xlu1 %v344_v1, %s831_s1 }
 0x562   :  { %v347_v9 = vpop.permute.xlu1 %346 }
 0x563   :  { %v349_v2 = vadd.f32 %v347_v9, %v343_v8 }
 0x565   :  { %770 = vtanh.f32 %v349_v2 }
 0x56b   :  { %v771_v3 = vpop.eup %770 }
 0x56c   :  { %v351_v6 = vmul.f32 %v771_v3, %v342_v0 }
 0x56e   :  { %353 = vrot.lane.b32.xlu2 %v351_v6, %s831_s1 }
 0x5c8   :  { %v354_v7 = vpop.permute.xlu2 %353 }
 0x5c9   :  { %733 = vmatmul.msk.f32.vlgmr.msra.gmra.mxu0 %vm166_vm3, %v354_v7  ;;  %734 = vmatmul.msk.f32.vlgmr.msra.gmra.mxu1 %vm166_vm3, %v354_v7 }
 0x5ca   :  { %619 = vmatpush.msra.mxu0 %v882_v27  ;;  %639 = vmatpush.msra.mxu1 %v884_v28  ;;  %v1094_v27 = vadd.f32 %v1036_v15, %v856_v4  ;;  %v1098_v28 = vadd.f32 %v1038_v17, %v858_v5 }
 0x5cc   :  { %620 = vmatpush.msra.mxu0 %v886_v29  ;;  %640 = vmatpush.msra.mxu1 %v890_v30  ;;  %v417_v17 = vrot.slane %v1094_v27, 2  ;;  %v418_v18 = vrot.slane %v1098_v28, 2  ;;  %v481_v52 = vrot.slane %v1094_v27, 4  ;;  %v482_v53 = vrot.slane %v1098_v28, 4 }
 0x5cd   :  { %v545_v7 = vrot.slane %v1094_v27, 6 }
 0x5ce   :  { %621 = vmatpush.msra.mxu0 %v892_v31  ;;  %641 = vmatpush.msra.mxu1 %v894_v32 }
 0x5d0   :  { %622 = vmatpush.msra.mxu0 %v900_v33  ;;  %642 = vmatpush.msra.mxu1 %v902_v34 }
 0x5d2   :  { %623 = vmatpush.msra.mxu0 %v908_v35  ;;  %643 = vmatpush.msra.mxu1 %v910_v36 }
 0x5d4   :  { %624 = vmatpush.msra.mxu0 %v916_v37  ;;  %644 = vmatpush.msra.mxu1 %v918_v38 }
 0x5d6   :  { %625 = vmatpush.msra.mxu0 %v924_v39  ;;  %645 = vmatpush.msra.mxu1 %v926_v40 }
 0x5d8   :  { %626 = vmatpush.msra.mxu0 %v945_v48  ;;  %646 = vmatpush.msra.mxu1 %v947_v49 }
 0x646   :  { %v374_v29 = vpop.f32.mrf.mxu0  ;;  %v394_v30 = vpop.f32.mrf.mxu1 }
 0x647   :  { %v375_v31 = vadd.f32 %v374_v29, %v1094_v27  ;;  %v395_v32 = vadd.f32 %v394_v30, %v1098_v28  ;;  %v546_v29 = vrot.slane %v1098_v28, 6  ;;  %v51_v27 = vld [vmem:[#allocation2 + $0xa0] sm:$0x3] }
 0x649   :  { %772 = vtanh.f32 %v375_v31 }
 0x64a   :  { %774 = vtanh.f32 %v395_v32 }
 0x64f   :  { %v773_v33 = vpop.eup %772 }
 0x650   :  { %v775_v34 = vpop.eup %774  ;;  %v399_v35 = vmul.f32 %v773_v33, %v868_v12 }
 0x651   :  { %v400_v36 = vmul.f32 %v775_v34, %v870_v13 }
 0x652   :  { %v401_v37 = vadd.f32 %v399_v35, %v872_v14 }
 0x653   :  { %v402_v38 = vadd.f32 %v400_v36, %v874_v16 }
 0x654   :  { %v403_v40 = vmul.f32 %v401_v37, %v349_v2 }
 0x655   :  { %v404_v39 = vmul.f32 %v402_v38, %v401_v37 }
 0x657   :  { %406 = vrot.lane.b32.xlu0 %v404_v39, %s831_s1 }
 0x6c9   :  { %v407_v48 = vpop.permute.xlu0 %406 }
 0x6ca   :  { %v409_v49 = vadd.f32 %v407_v48, %v403_v40 }
 0x6cc   :  { %776 = vtanh.f32 %v409_v49 }
 0x6d2   :  { %v777_v10 = vpop.eup %776 }
 0x6d3   :  { %v411_v11 = vmul.f32 %v777_v10, %v402_v38 }
 0x6d5   :  { %413 = vrot.lane.b32.xlu1 %v411_v11, %s831_s1 }
 0x747   :  { %v414_v15 = vpop.permute.xlu1 %413 }
 0x748   :  { %735 = vmatmul.msk.f32.vlgmr.msra.gmra.mxu2 %vm166_vm3, %v414_v15  ;;  %736 = vmatmul.msk.f32.vlgmr.msra.gmra.mxu3 %vm166_vm3, %v414_v15 }
 0x7cb   :  { %v440_v19 = vpop.f32.mrf.mxu2  ;;  %v460_v20 = vpop.f32.mrf.mxu3 }
 0x7cc   :  { %v441_v21 = vadd.f32 %v440_v19, %v417_v17  ;;  %v461_v22 = vadd.f32 %v460_v20, %v418_v18  ;;  %v52_v17 = vld [vmem:[#allocation2 + $0xa8] sm:$0x3] }
 0x7ce   :  { %778 = vtanh.f32 %v441_v21 }
 0x7cf   :  { %780 = vtanh.f32 %v461_v22 }
 0x7d4   :  { %v779_v23 = vpop.eup %778 }
 0x7d5   :  { %v781_v24 = vpop.eup %780  ;;  %v465_v25 = vmul.f32 %v779_v23, %v868_v12 }
 0x7d6   :  { %v466_v26 = vmul.f32 %v781_v24, %v870_v13 }
 0x7d7   :  { %v467_v41 = vadd.f32 %v465_v25, %v872_v14 }
 0x7d8   :  { %v468_v42 = vadd.f32 %v466_v26, %v874_v16 }
 0x7d9   :  { %v469_v44 = vmul.f32 %v467_v41, %v409_v49 }
 0x7da   :  { %v470_v43 = vmul.f32 %v468_v42, %v467_v41 }
 0x7dc   :  { %472 = vrot.lane.b32.xlu2 %v470_v43, %s831_s1 }
 0x836   :  { %v473_v45 = vpop.permute.xlu2 %472 }
 0x837   :  { %v475_v46 = vadd.f32 %v473_v45, %v469_v44 }
 0x839   :  { %782 = vtanh.f32 %v475_v46 }
 0x83f   :  { %v783_v47 = vpop.eup %782 }
 0x840   :  { %v477_v50 = vmul.f32 %v783_v47, %v468_v42 }
 0x842   :  { %479 = vrot.lane.b32.xlu0 %v477_v50, %s831_s1 }
 0x8b4   :  { %v480_v51 = vpop.permute.xlu0 %479 }
 0x8b5   :  { %737 = vmatmul.msk.f32.vlgmr.msrb.gmra.mxu0 %vm166_vm3, %v480_v51  ;;  %738 = vmatmul.msk.f32.vlgmr.msrb.gmra.mxu1 %vm166_vm3, %v480_v51 }
 0x932   :  { %v504_v54 = vpop.f32.mrf.mxu0  ;;  %v524_v55 = vpop.f32.mrf.mxu1 }
 0x933   :  { %v505_v56 = vadd.f32 %v504_v54, %v481_v52  ;;  %v525_v57 = vadd.f32 %v524_v55, %v482_v53 }
 0x935   :  { %784 = vtanh.f32 %v505_v56 }
 0x936   :  { %786 = vtanh.f32 %v525_v57 }
 0x93b   :  { %v785_v58 = vpop.eup %784 }
 0x93c   :  { %v787_v59 = vpop.eup %786  ;;  %v529_v60 = vmul.f32 %v785_v58, %v868_v12 }
 0x93d   :  { %v530_v61 = vmul.f32 %v787_v59, %v870_v13 }
 0x93e   :  { %v531_v62 = vadd.f32 %v529_v60, %v872_v14 }
 0x93f   :  { %v532_v63 = vadd.f32 %v530_v61, %v874_v16 }
 0x940   :  { %v533_v1 = vmul.f32 %v531_v62, %v475_v46 }
 0x941   :  { %v534_v0 = vmul.f32 %v532_v63, %v531_v62 }
 0x943   :  { %536 = vrot.lane.b32.xlu1 %v534_v0, %s831_s1 }
 0x9b5   :  { %v537_v8 = vpop.permute.xlu1 %536 }
 0x9b6   :  { %v539_v9 = vadd.f32 %v537_v8, %v533_v1 }
 0x9b8   :  { %788 = vtanh.f32 %v539_v9 }
 0x9be   :  { %v789_v2 = vpop.eup %788 }
 0x9bf   :  { %v541_v3 = vmul.f32 %v789_v2, %v532_v63 }
 0x9c1   :  { %543 = vrot.lane.b32.xlu2 %v541_v3, %s831_s1 }
 0xa1b   :  { %v544_v6 = vpop.permute.xlu2 %543 }
 0xa1c   :  { %739 = vmatmul.msk.f32.vlgmr.msrb.gmra.mxu2 %vm166_vm3, %v544_v6  ;;  %740 = vmatmul.msk.f32.vlgmr.msrb.gmra.mxu3 %vm166_vm3, %v544_v6 }
 0xa9f   :  { %v568_v30 = vpop.f32.mrf.mxu2  ;;  %v588_v31 = vpop.f32.mrf.mxu3 }
 0xaa0   :  { %v569_v32 = vadd.f32 %v568_v30, %v545_v7  ;;  %v589_v33 = vadd.f32 %v588_v31, %v546_v29  ;;  %v53_v7 = vld [vmem:[#allocation2 + $0xb0] ss:$0 sm:$0xff] }
 0xaa2   :  { %790 = vtanh.f32 %v569_v32 }
 0xaa3   :  { %792 = vtanh.f32 %v589_v33 }
 0xaa8   :  { %v791_v34 = vpop.eup %790 }
 0xaa9   :  { %v793_v35 = vpop.eup %792  ;;  %v593_v36 = vmul.f32 %v791_v34, %v868_v12 }
 0xaaa   :  { %v594_v37 = vmul.f32 %v793_v35, %v870_v13 }
 0xaab   :  { %v595_v38 = vadd.f32 %v593_v36, %v872_v14 }
 0xaac   :  { %v596_v39 = vadd.f32 %v594_v37, %v874_v16 }
 0xaad   :  { %v597_v28 = vmul.f32 %v595_v38, %v539_v9 }
 0xaae   :  { %v598_v40 = vmul.f32 %v596_v39, %v595_v38 }
 0xab0   :  { %600 = vrot.lane.b32.xlu0 %v598_v40, %s831_s1 }
 0xab8   :  { %667 = vrot.lane.b32.xlu0 %v51_v27, %s831_s1 }
 0xb22   :  { %v601_v48 = vpop.permute.xlu0 %600 }
 0xb23   :  { %v603_v49 = vadd.f32 %v601_v48, %v597_v28 }
 0xb25   :  { %794 = vtanh.f32 %v603_v49 }
 0xb2a   :  { %v668_v43 = vpop.permute.xlu0 %667 }
 0xb2b   :  { %v795_v10 = vpop.eup %794 }
 0xb2c   :  { %v605_v11 = vmul.f32 %v795_v10, %v596_v39 }
 0xb2e   :  { %607 = vrot.lane.b32.xlu1 %v605_v11, %s831_s1  ;;  %v670_v44 = vmul.f32 %v668_v43, %v605_v11 }
 0xb36   :  { %674 = vrot.lane.b32.xlu1 %v52_v17, %s831_s1 }
 0xba0   :  { %v608_v15 = vpop.permute.xlu1 %607 }
 0xba1   :  { %741 = vmatmul.msk.f32.vlgmr.msra.gmra.mxu0 %vm166_vm3, %v608_v15  ;;  %742 = vmatmul.msk.f32.vlgmr.msra.gmra.mxu1 %vm166_vm3, %v608_v15 }
 0xc1e   :  { %v628_v18 = vpop.f32.mrf.mxu0  ;;  %v648_v19 = vpop.f32.mrf.mxu1 }
 0xc1f   :  { %v629_v20 = vadd.f32 %v628_v18, %v856_v4  ;;  %v649_v21 = vadd.f32 %v648_v19, %v858_v5  ;;  %v671_v4 = vmul.f32 %v603_v49, %v51_v27 }
 0xc21   :  { %796 = vtanh.f32 %v629_v20  ;;  %v672_v45 = vadd.f32 %v671_v4, %v670_v44 }
 0xc22   :  { %798 = vtanh.f32 %v649_v21 }
 0xc27   :  { %v797_v22 = vpop.eup %796 }
 0xc28   :  { %v799_v23 = vpop.eup %798  ;;  %v653_v24 = vmul.f32 %v797_v22, %v868_v12 }
 0xc29   :  { %v654_v25 = vmul.f32 %v799_v23, %v870_v13 }
 0xc2a   :  { %v655_v26 = vadd.f32 %v653_v24, %v872_v14  ;;  %v675_v14 = vpop.permute.xlu1 %674 }
 0xc2b   :  { %v656_v41 = vadd.f32 %v654_v25, %v874_v16 }
 0xc2c   :  { %v657_v5 = vmul.f32 %v655_v26, %v603_v49 }
 0xc2d   :  { %v658_v42 = vmul.f32 %v656_v41, %v655_v26 }
 0xc2f   :  { %660 = vrot.lane.b32.xlu2 %v658_v42, %s831_s1 }
 0xc37   :  { %681 = vrot.lane.b32.xlu2 %v672_v45, %s831_s1 }
 0xc89   :  { %v661_v46 = vpop.permute.xlu2 %660 }
 0xc8a   :  { %v663_v47 = vadd.f32 %v661_v46, %v657_v5 }
 0xc8c   :  { %800 = vtanh.f32 %v663_v47  ;;  %v678_v51 = vmul.f32 %v663_v47, %v52_v17 }
 0xc91   :  { %v682_v12 = vpop.permute.xlu2 %681 }
 0xc92   :  { %v801_v13 = vpop.eup %800  ;;  %v685_v50 = vsel %vm684_vm4, %v682_v12, 0.0 }
 0xc93   :  { %686 = vadd.xlane.f32.xlu1 %v685_v50  ;;  %v665_v16 = vmul.f32 %v801_v13, %v656_v41 }
 0xc95   :  { %v677_v52 = vmul.f32 %v675_v14, %v665_v16 }
 0xc97   :  { %v679_v53 = vadd.f32 %v678_v51, %v677_v52 }
 0xc99   :  { %697 = vrot.lane.b32.xlu0 %v679_v53, %s831_s1 }
 0xd06   :  { %v687_v56 = vpop.xlane.xlu1 %686 }
 0xd07   :  { %v689_v57 = vsel %vm688_vm5, %v687_v56, 0.0 }
 0xd08   :  { %v690_v58 = vrot.slane %v689_v57, 4 }
 0xd0a   :  { %v691_v59 = vadd.f32 %v690_v58, %v689_v57 }
 0xd0b   :  { %v698_v54 = vpop.permute.xlu0 %697 }
 0xd0c   :  { %v700_v55 = vsel %vm684_vm4, %v698_v54, 0.0  ;;  %v692_v60 = vrot.slane %v691_v59, 2 }
 0xd0d   :  { %701 = vadd.xlane.f32.xlu2 %v700_v55 }
 0xd0e   :  { %v693_v0 = vadd.f32 %v692_v60, %v691_v59 }
 0xd10   :  { %v694_v9 = vrot.slane %v693_v0, 1 }
 0xd12   :  { %v695_v6 = vadd.f32 %v694_v9, %v693_v0 }
 0xd80   :  { %v702_v61 = vpop.xlane.xlu2 %701 }
 0xd81   :  { %v703_v62 = vsel %vm688_vm5, %v702_v61, 0.0 }
 0xd82   :  { %v704_v63 = vrot.slane %v703_v62, 4 }
 0xd84   :  { %v705_v1 = vadd.f32 %v704_v63, %v703_v62 }
 0xd86   :  { %v706_v8 = vrot.slane %v705_v1, 2 }
 0xd88   :  { %v707_v2 = vadd.f32 %v706_v8, %v705_v1 }
 0xd8a   :  { %v708_v3 = vrot.slane %v707_v2, 1 }
 0xd8c   :  { %v709_v29 = vadd.f32 %v708_v3, %v707_v2 }
 0xd8e   :  { %v711_v30 = vsel %vm710_vm6, %v695_v6, %v709_v29 }
 0xd8f   :  { %v712_v31 = vadd.f32 %v711_v30, %v53_v7 }
 0xd91   :  { %714 = vst.msk [vmem:[%s1156_s2] sm:$0x3] %vm713_vm7, %v712_v31 }
 0xd92   :  { %719 = vsyncpa [#allocation3], 1 }

</bundles_post_ra>
